<compile_context>
chip_gen: v7x
topology: tpu7x:2x2x1
jax: 0.10.0
libtpu: 0.0.40
codegen_flags: <defaults>
</compile_context>

<pallas_src>
import functools

import numpy as np
import jax
import jax.numpy as jnp
from jax.experimental import pallas as pl
from jax.experimental.pallas import tpu as pltpu


# ------------------------------ Pallas kernel ------------------------------ #

def _dqn_fused_kernel(p_ref, w1_ref, b1_ref, w2_ref, b2_ref, wfc_ref, bfc_ref,
                      o_ref, *, batch):
    """Fully fused DQN forward for one batch chunk.

    p_ref   : [4, 9*batch, 49] composite 7x7 input windows, one slab per
              2x2-pool offset d = di*2+dj; row index within a slab is
              s*batch + b with s = pool_row*3 + pool_col.
    w1_ref  : [49, 144]  conv1 weights expanded so (window @ w1) yields the 3x3
              grid of conv1 outputs inside the window, column order
              (conv2_tap, c1out) -- i.e. exactly conv2's im2col row.
    w2_ref  : [144, 32]  conv2 weights in matching (tap, cin) x cout order.
    wfc_ref : [9, 32, A] fc weights with the NCHW flatten folded in:
              wfc_ref[s, c, a] = fc.weight[a, c*9 + s].
    """
    w1 = w1_ref[...]
    b1 = b1_ref[...]
    w2 = w2_ref[...]
    b2 = b2_ref[...]

    # conv1(+bias+relu) and conv2(+bias+relu) for each of the 4 pool offsets;
    # the running elementwise max over offsets IS the 2x2 max-pool.  All
    # intermediates stay in vregs.
    pooled = None
    for d in range(4):                                    # unrolled at trace time
        z = jnp.dot(p_ref[d], w1, preferred_element_type=jnp.float32)
        z = jnp.maximum(z + b1, 0.0)                      # [9B, 144]
        y = jnp.dot(z, w2, preferred_element_type=jnp.float32)
        y = jnp.maximum(y + b2, 0.0)                      # [9B, 32]
        pooled = y if pooled is None else jnp.maximum(pooled, y)

    # dropout1(p=0.25): identity in eval / inference mode.

    # fc1: torch.flatten(NCHW) ordering is folded into wfc_ref's layout, so the
    # Linear is 9 small accumulating matmuls over static slices of the pooled
    # vreg value (no VMEM round trip).
    acc = jnp.zeros(o_ref.shape, jnp.float32)
    for s in range(9):                                    # unrolled
        rows = pooled[s * batch:(s + 1) * batch, :]       # [B, 32]
        acc = acc + jnp.dot(rows, wfc_ref[s], preferred_element_type=jnp.float32)
    o_ref[...] = acc + bfc_ref[...]


# ------------------------------- forward pass ------------------------------ #

def _pick_batch_tile(batch, cap=64):
    """Batch-chunk size: full batch when small; otherwise the largest divisor
    of `batch` that is a multiple of 8 (sublane alignment for tiled blocks)."""
    if batch <= cap:
        return batch
    for t in range(min(batch, cap), 7, -1):
        if batch % t == 0 and t % 8 == 0:
            return t
    return batch


def dqn_forward(params, x_nchw):
    B = x_nchw.shape[0]
    assert x_nchw.shape[1:] == (1, 28, 28), x_nchw.shape
    n_actions = params["wfc"].shape[-1]

    tb = _pick_batch_tile(B)          # batch rows per grid step
    nchunk = B // tb
    rt = 9 * tb                       # pooled rows per grid step

    # C=1 -> NCHW->[B,H,W] is a pure (metadata) reshape; no transpose needed.
    x = x_nchw.reshape(B, 28, 28).astype(jnp.float32)

    # Composite receptive field of conv1(k3,s2) o conv2(k3,s2): 7x7, stride 4.
    # Extract all 6x6 windows, then reorder rows to
    # (pool offset d, batch-chunk, spatial s, batch-in-chunk).
    idx = (4 * jnp.arange(6))[:, None] + jnp.arange(7)[None, :]      # [6, 7]
    xr = x[:, idx, :]                                                # [B,6,7,28]
    xc = xr[:, :, :, idx]                                            # [B,6,7,6,7]
    win = jnp.transpose(xc, (0, 1, 3, 2, 4)).reshape(
        nchunk, tb, 3, 2, 3, 2, 49)                                  # [nc,tb,a,di,c,dj,49]
    # -> [d = di*2+dj, row = ((chunk*3+a)*3+c)*tb + b_local, 49]
    P = jnp.transpose(win, (3, 5, 0, 2, 4, 1, 6)).reshape(4, nchunk * rt, 49)

    kernel = functools.partial(_dqn_fused_kernel, batch=tb)

    def const_spec(shape):
        zeros = (0,) * len(shape)
        return pl.BlockSpec(shape, lambda i, _z=zeros: _z)

    return pl.pallas_call(
        kernel,
        out_shape=jax.ShapeDtypeStruct((B, n_actions), jnp.float32),
        grid=(nchunk,),
        in_specs=[pl.BlockSpec((4, rt, 49), lambda i: (0, i, 0)),
                  const_spec((49, 144)), const_spec((1, 144)),
                  const_spec((144, 32)), const_spec((1, 32)),
                  const_spec((9, 32, n_actions)), const_spec((1, n_actions))],
        out_specs=pl.BlockSpec((tb, n_actions), lambda i: (i, 0)),
        compiler_params=pltpu.CompilerParams(
            dimension_semantics=("parallel",)),
    )(P, params["w1e"], params["b1e"], params["w2p"], params["b2p"],
      params["wfc"], params["bfc"])


# ----------------------- params: init + one-time refold -------------------- #

def init_raw_params(key, n_actions=4):
    """PyTorch-default-style uniform(+-1/sqrt(fan_in)) init, torch layouts."""
    ks = jax.random.split(key, 6)

    def u(k, shape, fan_in):
        b = 1.0 / float(np.sqrt(fan_in))
        return jax.random.uniform(k, shape, jnp.float32, -b, b)

    return {
        "w1": u(ks[0], (16, 1, 3, 3), 9),       "b1": u(ks[1], (16,), 9),
        "w2": u(ks[2], (32, 16, 3, 3), 144),    "b2": u(ks[3], (32,), 144),
        "wfc": u(ks[4], (n_actions, 288), 288), "bfc": u(ks[5], (n_actions,), 288),
    }


def refold_params(raw):
    """One-time host-side refold of torch-layout weights into kernel layouts."""
    w1 = np.asarray(raw["w1"])     # [16, 1, 3, 3]
    b1 = np.asarray(raw["b1"])     # [16]
    w2 = np.asarray(raw["w2"])     # [32, 16, 3, 3]
    b2 = np.asarray(raw["b2"])     # [32]
    wfc = np.asarray(raw["wfc"])   # [A, 288]
    bfc = np.asarray(raw["bfc"])   # [A]

    # conv1 expanded: window[49] @ w1e -> conv1 outputs at the 3x3 positions
    # inside the 7x7 window, column order = (conv2 tap (kh2,kw2), c1out).
    w1e = np.zeros((49, 144), np.float32)
    for kh2 in range(3):
        for kw2 in range(3):
            col0 = (kh2 * 3 + kw2) * 16
            for kh1 in range(3):
                for kw1 in range(3):
                    row = (2 * kh2 + kh1) * 7 + (2 * kw2 + kw1)
                    w1e[row, col0:col0 + 16] = w1[:, 0, kh1, kw1]
    b1e = np.tile(b1, 9)[None, :]                                  # [1, 144]

    # conv2 in matching (kh2, kw2, cin) x cout im2col order.
    w2p = np.transpose(w2, (2, 3, 1, 0)).reshape(144, 32)          # [144, 32]
    b2p = b2[None, :]                                              # [1, 32]

    # fc with NCHW flatten (index = cout*9 + spatial) folded in.
    wfc_r = np.transpose(wfc.reshape(-1, 32, 9), (2, 1, 0))        # [9, 32, A]
    bfc_r = bfc[None, :]                                           # [1, A]

    return {
        "w1e": jnp.asarray(w1e), "b1e": jnp.asarray(b1e),
        "w2p": jnp.asarray(w2p), "b2p": jnp.asarray(b2p),
        "wfc": jnp.asarray(wfc_r), "bfc": jnp.asarray(bfc_r),
    }


# ------------------------------ pure-JAX reference ------------------------- #

def dqn_reference(raw, x_nchw):
    dn = ("NCHW", "OIHW", "NCHW")
    hi = jax.lax.Precision.HIGHEST
    y = jax.lax.conv_general_dilated(x_nchw, raw["w1"], (2, 2), "VALID",
                                     dimension_numbers=dn, precision=hi)
    y = jax.nn.relu(y + raw["b1"][None, :, None, None])
    y = jax.lax.conv_general_dilated(y, raw["w2"], (2, 2), "VALID",
                                     dimension_numbers=dn, precision=hi)
    y = jax.nn.relu(y + raw["b2"][None, :, None, None])
    y = jax.lax.reduce_window(y, -jnp.inf, jax.lax.max,
                              (1, 1, 2, 2), (1, 1, 2, 2), "VALID")
    y = y.reshape(y.shape[0], -1)                       # torch.flatten (NCHW)
    return y @ raw["wfc"].T + raw["bfc"][None, :]


# ----------------------------------- main ----------------------------------- #

if __name__ == "__main__":
    key = jax.random.PRNGKey(0)
    k_params, k_x = jax.random.split(key)

    n_actions = 4
    raw = init_raw_params(k_params, n_actions)
    params = refold_params(raw)

    # Input shape implied by the module (Linear(288) => 28x28, Cin=1).
    x = jax.random.normal(k_x, (2, 1, 28, 28), dtype=jnp.float32)

    fwd = jax.jit(dqn_forward)
    out = fwd(params, x)
    jax.block_until_ready(out)

    assert out.shape == (2, n_actions), out.shape
    assert out.dtype == jnp.float32

    ref = dqn_reference(raw, x)
    err = float(jnp.max(jnp.abs(out - ref)))
    assert jnp.allclose(out, ref, rtol=5e-3, atol=5e-3), f"max abs err {err}"

    print("KERNEL_OK")
</pallas_src>

<mosaic_0001>
module attributes {stable_mosaic.version = 11 : i64} {
  func.func @_dqn_fused_kernel(%arg0: i32, %arg1: memref<4x18x49xf32, #tpu.memory_space<vmem>>, %arg2: memref<49x144xf32, #tpu.memory_space<vmem>>, %arg3: memref<1x144xf32, #tpu.memory_space<vmem>>, %arg4: memref<144x32xf32, #tpu.memory_space<vmem>>, %arg5: memref<1x32xf32, #tpu.memory_space<vmem>>, %arg6: memref<9x32x4xf32, #tpu.memory_space<vmem>>, %arg7: memref<1x4xf32, #tpu.memory_space<vmem>>, %arg8: memref<2x4xf32, #tpu.memory_space<vmem>>) attributes {dimension_semantics = [#tpu.dimension_semantics<parallel>], iteration_bounds = array<i64: 1>, scalar_prefetch = 0 : i64, scratch_operands = 0 : i64, tpu.core_type = #tpu.core_type<tc>, window_params = [{transform_indices = @transform_0, window_bounds = array<i64: 4, 18, 49>}, {pipeline_mode = #tpu.pipeline_mode<synchronous>, transform_indices = @transform_1, window_bounds = array<i64: 49, 144>}, {pipeline_mode = #tpu.pipeline_mode<synchronous>, transform_indices = @transform_2, window_bounds = array<i64: 1, 144>}, {pipeline_mode = #tpu.pipeline_mode<synchronous>, transform_indices = @transform_3, window_bounds = array<i64: 144, 32>}, {pipeline_mode = #tpu.pipeline_mode<synchronous>, transform_indices = @transform_4, window_bounds = array<i64: 1, 32>}, {pipeline_mode = #tpu.pipeline_mode<synchronous>, transform_indices = @transform_5, window_bounds = array<i64: 9, 32, 4>}, {pipeline_mode = #tpu.pipeline_mode<synchronous>, transform_indices = @transform_6, window_bounds = array<i64: 1, 4>}, {transform_indices = @transform_7, window_bounds = array<i64: 2, 4>}]} {
    %c0 = arith.constant 0 : index
    %c0_0 = arith.constant 0 : index
    %0 = vector.load %arg2[%c0, %c0_0] : memref<49x144xf32, #tpu.memory_space<vmem>>, vector<49x144xf32>
    %c0_1 = arith.constant 0 : index
    %c0_2 = arith.constant 0 : index
    %1 = vector.load %arg3[%c0_1, %c0_2] : memref<1x144xf32, #tpu.memory_space<vmem>>, vector<1x144xf32>
    %c0_3 = arith.constant 0 : index
    %c0_4 = arith.constant 0 : index
    %2 = vector.load %arg4[%c0_3, %c0_4] : memref<144x32xf32, #tpu.memory_space<vmem>>, vector<144x32xf32>
    %c0_5 = arith.constant 0 : index
    %c0_6 = arith.constant 0 : index
    %3 = vector.load %arg5[%c0_5, %c0_6] : memref<1x32xf32, #tpu.memory_space<vmem>>, vector<1x32xf32>
    %c0_7 = arith.constant 0 : index
    %c0_8 = arith.constant 0 : index
    %c0_9 = arith.constant 0 : index
    %4 = vector.load %arg1[%c0_7, %c0_8, %c0_9] : memref<4x18x49xf32, #tpu.memory_space<vmem>>, vector<1x18x49xf32>
    %5 = vector.shape_cast %4 : vector<1x18x49xf32> to vector<18x49xf32>
    %cst = arith.constant dense<0.000000e+00> : vector<18x144xf32>
    %6 = tpu.matmul %5, %0, %cst {dimension_numbers = #tpu.dot_dimension_numbers<[1], [0], [0], [1], [0, 0, 1, 1], [], []>} : vector<18x49xf32>, vector<49x144xf32>, vector<18x144xf32> -> vector<18x144xf32>
    %7 = vector.broadcast %1 : vector<1x144xf32> to vector<18x144xf32>
    %8 = arith.addf %6, %7 : vector<18x144xf32>
    %cst_10 = arith.constant 0.000000e+00 : f32
    %9 = vector.broadcast %cst_10 : f32 to vector<18x144xf32>
    %10 = arith.maximumf %8, %9 : vector<18x144xf32>
    %cst_11 = arith.constant dense<0.000000e+00> : vector<18x32xf32>
    %11 = tpu.matmul %10, %2, %cst_11 {dimension_numbers = #tpu.dot_dimension_numbers<[1], [0], [0], [1], [0, 0, 1, 1], [], []>} : vector<18x144xf32>, vector<144x32xf32>, vector<18x32xf32> -> vector<18x32xf32>
    %12 = vector.broadcast %3 : vector<1x32xf32> to vector<18x32xf32>
    %13 = arith.addf %11, %12 : vector<18x32xf32>
    %cst_12 = arith.constant 0.000000e+00 : f32
    %14 = vector.broadcast %cst_12 : f32 to vector<18x32xf32>
    %15 = arith.maximumf %13, %14 : vector<18x32xf32>
    %c1 = arith.constant 1 : index
    %c0_13 = arith.constant 0 : index
    %c0_14 = arith.constant 0 : index
    %16 = vector.load %arg1[%c1, %c0_13, %c0_14] : memref<4x18x49xf32, #tpu.memory_space<vmem>>, vector<1x18x49xf32>
    %17 = vector.shape_cast %16 : vector<1x18x49xf32> to vector<18x49xf32>
    %cst_15 = arith.constant dense<0.000000e+00> : vector<18x144xf32>
    %18 = tpu.matmul %17, %0, %cst_15 {dimension_numbers = #tpu.dot_dimension_numbers<[1], [0], [0], [1], [0, 0, 1, 1], [], []>} : vector<18x49xf32>, vector<49x144xf32>, vector<18x144xf32> -> vector<18x144xf32>
    %19 = vector.broadcast %1 : vector<1x144xf32> to vector<18x144xf32>
    %20 = arith.addf %18, %19 : vector<18x144xf32>
    %cst_16 = arith.constant 0.000000e+00 : f32
    %21 = vector.broadcast %cst_16 : f32 to vector<18x144xf32>
    %22 = arith.maximumf %20, %21 : vector<18x144xf32>
    %cst_17 = arith.constant dense<0.000000e+00> : vector<18x32xf32>
    %23 = tpu.matmul %22, %2, %cst_17 {dimension_numbers = #tpu.dot_dimension_numbers<[1], [0], [0], [1], [0, 0, 1, 1], [], []>} : vector<18x144xf32>, vector<144x32xf32>, vector<18x32xf32> -> vector<18x32xf32>
    %24 = vector.broadcast %3 : vector<1x32xf32> to vector<18x32xf32>
    %25 = arith.addf %23, %24 : vector<18x32xf32>
    %cst_18 = arith.constant 0.000000e+00 : f32
    %26 = vector.broadcast %cst_18 : f32 to vector<18x32xf32>
    %27 = arith.maximumf %25, %26 : vector<18x32xf32>
    %28 = arith.maximumf %15, %27 : vector<18x32xf32>
    %c2 = arith.constant 2 : index
    %c0_19 = arith.constant 0 : index
    %c0_20 = arith.constant 0 : index
    %29 = vector.load %arg1[%c2, %c0_19, %c0_20] : memref<4x18x49xf32, #tpu.memory_space<vmem>>, vector<1x18x49xf32>
    %30 = vector.shape_cast %29 : vector<1x18x49xf32> to vector<18x49xf32>
    %cst_21 = arith.constant dense<0.000000e+00> : vector<18x144xf32>
    %31 = tpu.matmul %30, %0, %cst_21 {dimension_numbers = #tpu.dot_dimension_numbers<[1], [0], [0], [1], [0, 0, 1, 1], [], []>} : vector<18x49xf32>, vector<49x144xf32>, vector<18x144xf32> -> vector<18x144xf32>
    %32 = vector.broadcast %1 : vector<1x144xf32> to vector<18x144xf32>
    %33 = arith.addf %31, %32 : vector<18x144xf32>
    %cst_22 = arith.constant 0.000000e+00 : f32
    %34 = vector.broadcast %cst_22 : f32 to vector<18x144xf32>
    %35 = arith.maximumf %33, %34 : vector<18x144xf32>
    %cst_23 = arith.constant dense<0.000000e+00> : vector<18x32xf32>
    %36 = tpu.matmul %35, %2, %cst_23 {dimension_numbers = #tpu.dot_dimension_numbers<[1], [0], [0], [1], [0, 0, 1, 1], [], []>} : vector<18x144xf32>, vector<144x32xf32>, vector<18x32xf32> -> vector<18x32xf32>
    %37 = vector.broadcast %3 : vector<1x32xf32> to vector<18x32xf32>
    %38 = arith.addf %36, %37 : vector<18x32xf32>
    %cst_24 = arith.constant 0.000000e+00 : f32
    %39 = vector.broadcast %cst_24 : f32 to vector<18x32xf32>
    %40 = arith.maximumf %38, %39 : vector<18x32xf32>
    %41 = arith.maximumf %28, %40 : vector<18x32xf32>
    %c3 = arith.constant 3 : index
    %c0_25 = arith.constant 0 : index
    %c0_26 = arith.constant 0 : index
    %42 = vector.load %arg1[%c3, %c0_25, %c0_26] : memref<4x18x49xf32, #tpu.memory_space<vmem>>, vector<1x18x49xf32>
    %43 = vector.shape_cast %42 : vector<1x18x49xf32> to vector<18x49xf32>
    %cst_27 = arith.constant dense<0.000000e+00> : vector<18x144xf32>
    %44 = tpu.matmul %43, %0, %cst_27 {dimension_numbers = #tpu.dot_dimension_numbers<[1], [0], [0], [1], [0, 0, 1, 1], [], []>} : vector<18x49xf32>, vector<49x144xf32>, vector<18x144xf32> -> vector<18x144xf32>
    %45 = vector.broadcast %1 : vector<1x144xf32> to vector<18x144xf32>
    %46 = arith.addf %44, %45 : vector<18x144xf32>
    %cst_28 = arith.constant 0.000000e+00 : f32
    %47 = vector.broadcast %cst_28 : f32 to vector<18x144xf32>
    %48 = arith.maximumf %46, %47 : vector<18x144xf32>
    %cst_29 = arith.constant dense<0.000000e+00> : vector<18x32xf32>
    %49 = tpu.matmul %48, %2, %cst_29 {dimension_numbers = #tpu.dot_dimension_numbers<[1], [0], [0], [1], [0, 0, 1, 1], [], []>} : vector<18x144xf32>, vector<144x32xf32>, vector<18x32xf32> -> vector<18x32xf32>
    %50 = vector.broadcast %3 : vector<1x32xf32> to vector<18x32xf32>
    %51 = arith.addf %49, %50 : vector<18x32xf32>
    %cst_30 = arith.constant 0.000000e+00 : f32
    %52 = vector.broadcast %cst_30 : f32 to vector<18x32xf32>
    %53 = arith.maximumf %51, %52 : vector<18x32xf32>
    %54 = arith.maximumf %41, %53 : vector<18x32xf32>
    %cst_31 = arith.constant 0.000000e+00 : f32
    %55 = vector.broadcast %cst_31 : f32 to vector<2x4xf32>
    %56 = vector.extract_strided_slice %54 {offsets = [0, 0], sizes = [2, 32], strides = [1, 1]} : vector<18x32xf32> to vector<2x32xf32>
    %c0_32 = arith.constant 0 : index
    %c0_33 = arith.constant 0 : index
    %c0_34 = arith.constant 0 : index
    %57 = vector.load %arg6[%c0_32, %c0_33, %c0_34] : memref<9x32x4xf32, #tpu.memory_space<vmem>>, vector<1x32x4xf32>
    %58 = vector.shape_cast %57 : vector<1x32x4xf32> to vector<32x4xf32>
    %cst_35 = arith.constant dense<0.000000e+00> : vector<2x4xf32>
    %59 = tpu.matmul %56, %58, %cst_35 {dimension_numbers = #tpu.dot_dimension_numbers<[1], [0], [0], [1], [0, 0, 1, 1], [], []>} : vector<2x32xf32>, vector<32x4xf32>, vector<2x4xf32> -> vector<2x4xf32>
    %60 = arith.addf %55, %59 : vector<2x4xf32>
    %61 = vector.extract_strided_slice %54 {offsets = [2, 0], sizes = [2, 32], strides = [1, 1]} : vector<18x32xf32> to vector<2x32xf32>
    %c1_36 = arith.constant 1 : index
    %c0_37 = arith.constant 0 : index
    %c0_38 = arith.constant 0 : index
    %62 = vector.load %arg6[%c1_36, %c0_37, %c0_38] : memref<9x32x4xf32, #tpu.memory_space<vmem>>, vector<1x32x4xf32>
    %63 = vector.shape_cast %62 : vector<1x32x4xf32> to vector<32x4xf32>
    %cst_39 = arith.constant dense<0.000000e+00> : vector<2x4xf32>
    %64 = tpu.matmul %61, %63, %cst_39 {dimension_numbers = #tpu.dot_dimension_numbers<[1], [0], [0], [1], [0, 0, 1, 1], [], []>} : vector<2x32xf32>, vector<32x4xf32>, vector<2x4xf32> -> vector<2x4xf32>
    %65 = arith.addf %60, %64 : vector<2x4xf32>
    %66 = vector.extract_strided_slice %54 {offsets = [4, 0], sizes = [2, 32], strides = [1, 1]} : vector<18x32xf32> to vector<2x32xf32>
    %c2_40 = arith.constant 2 : index
    %c0_41 = arith.constant 0 : index
    %c0_42 = arith.constant 0 : index
    %67 = vector.load %arg6[%c2_40, %c0_41, %c0_42] : memref<9x32x4xf32, #tpu.memory_space<vmem>>, vector<1x32x4xf32>
    %68 = vector.shape_cast %67 : vector<1x32x4xf32> to vector<32x4xf32>
    %cst_43 = arith.constant dense<0.000000e+00> : vector<2x4xf32>
    %69 = tpu.matmul %66, %68, %cst_43 {dimension_numbers = #tpu.dot_dimension_numbers<[1], [0], [0], [1], [0, 0, 1, 1], [], []>} : vector<2x32xf32>, vector<32x4xf32>, vector<2x4xf32> -> vector<2x4xf32>
    %70 = arith.addf %65, %69 : vector<2x4xf32>
    %71 = vector.extract_strided_slice %54 {offsets = [6, 0], sizes = [2, 32], strides = [1, 1]} : vector<18x32xf32> to vector<2x32xf32>
    %c3_44 = arith.constant 3 : index
    %c0_45 = arith.constant 0 : index
    %c0_46 = arith.constant 0 : index
    %72 = vector.load %arg6[%c3_44, %c0_45, %c0_46] : memref<9x32x4xf32, #tpu.memory_space<vmem>>, vector<1x32x4xf32>
    %73 = vector.shape_cast %72 : vector<1x32x4xf32> to vector<32x4xf32>
    %cst_47 = arith.constant dense<0.000000e+00> : vector<2x4xf32>
    %74 = tpu.matmul %71, %73, %cst_47 {dimension_numbers = #tpu.dot_dimension_numbers<[1], [0], [0], [1], [0, 0, 1, 1], [], []>} : vector<2x32xf32>, vector<32x4xf32>, vector<2x4xf32> -> vector<2x4xf32>
    %75 = arith.addf %70, %74 : vector<2x4xf32>
    %76 = vector.extract_strided_slice %54 {offsets = [8, 0], sizes = [2, 32], strides = [1, 1]} : vector<18x32xf32> to vector<2x32xf32>
    %c4 = arith.constant 4 : index
    %c0_48 = arith.constant 0 : index
    %c0_49 = arith.constant 0 : index
    %77 = vector.load %arg6[%c4, %c0_48, %c0_49] : memref<9x32x4xf32, #tpu.memory_space<vmem>>, vector<1x32x4xf32>
    %78 = vector.shape_cast %77 : vector<1x32x4xf32> to vector<32x4xf32>
    %cst_50 = arith.constant dense<0.000000e+00> : vector<2x4xf32>
    %79 = tpu.matmul %76, %78, %cst_50 {dimension_numbers = #tpu.dot_dimension_numbers<[1], [0], [0], [1], [0, 0, 1, 1], [], []>} : vector<2x32xf32>, vector<32x4xf32>, vector<2x4xf32> -> vector<2x4xf32>
    %80 = arith.addf %75, %79 : vector<2x4xf32>
    %81 = vector.extract_strided_slice %54 {offsets = [10, 0], sizes = [2, 32], strides = [1, 1]} : vector<18x32xf32> to vector<2x32xf32>
    %c5 = arith.constant 5 : index
    %c0_51 = arith.constant 0 : index
    %c0_52 = arith.constant 0 : index
    %82 = vector.load %arg6[%c5, %c0_51, %c0_52] : memref<9x32x4xf32, #tpu.memory_space<vmem>>, vector<1x32x4xf32>
    %83 = vector.shape_cast %82 : vector<1x32x4xf32> to vector<32x4xf32>
    %cst_53 = arith.constant dense<0.000000e+00> : vector<2x4xf32>
    %84 = tpu.matmul %81, %83, %cst_53 {dimension_numbers = #tpu.dot_dimension_numbers<[1], [0], [0], [1], [0, 0, 1, 1], [], []>} : vector<2x32xf32>, vector<32x4xf32>, vector<2x4xf32> -> vector<2x4xf32>
    %85 = arith.addf %80, %84 : vector<2x4xf32>
    %86 = vector.extract_strided_slice %54 {offsets = [12, 0], sizes = [2, 32], strides = [1, 1]} : vector<18x32xf32> to vector<2x32xf32>
    %c6 = arith.constant 6 : index
    %c0_54 = arith.constant 0 : index
    %c0_55 = arith.constant 0 : index
    %87 = vector.load %arg6[%c6, %c0_54, %c0_55] : memref<9x32x4xf32, #tpu.memory_space<vmem>>, vector<1x32x4xf32>
    %88 = vector.shape_cast %87 : vector<1x32x4xf32> to vector<32x4xf32>
    %cst_56 = arith.constant dense<0.000000e+00> : vector<2x4xf32>
    %89 = tpu.matmul %86, %88, %cst_56 {dimension_numbers = #tpu.dot_dimension_numbers<[1], [0], [0], [1], [0, 0, 1, 1], [], []>} : vector<2x32xf32>, vector<32x4xf32>, vector<2x4xf32> -> vector<2x4xf32>
    %90 = arith.addf %85, %89 : vector<2x4xf32>
    %91 = vector.extract_strided_slice %54 {offsets = [14, 0], sizes = [2, 32], strides = [1, 1]} : vector<18x32xf32> to vector<2x32xf32>
    %c7 = arith.constant 7 : index
    %c0_57 = arith.constant 0 : index
    %c0_58 = arith.constant 0 : index
    %92 = vector.load %arg6[%c7, %c0_57, %c0_58] : memref<9x32x4xf32, #tpu.memory_space<vmem>>, vector<1x32x4xf32>
    %93 = vector.shape_cast %92 : vector<1x32x4xf32> to vector<32x4xf32>
    %cst_59 = arith.constant dense<0.000000e+00> : vector<2x4xf32>
    %94 = tpu.matmul %91, %93, %cst_59 {dimension_numbers = #tpu.dot_dimension_numbers<[1], [0], [0], [1], [0, 0, 1, 1], [], []>} : vector<2x32xf32>, vector<32x4xf32>, vector<2x4xf32> -> vector<2x4xf32>
    %95 = arith.addf %90, %94 : vector<2x4xf32>
    %96 = vector.extract_strided_slice %54 {offsets = [16, 0], sizes = [2, 32], strides = [1, 1]} : vector<18x32xf32> to vector<2x32xf32>
    %c8 = arith.constant 8 : index
    %c0_60 = arith.constant 0 : index
    %c0_61 = arith.constant 0 : index
    %97 = vector.load %arg6[%c8, %c0_60, %c0_61] : memref<9x32x4xf32, #tpu.memory_space<vmem>>, vector<1x32x4xf32>
    %98 = vector.shape_cast %97 : vector<1x32x4xf32> to vector<32x4xf32>
    %cst_62 = arith.constant dense<0.000000e+00> : vector<2x4xf32>
    %99 = tpu.matmul %96, %98, %cst_62 {dimension_numbers = #tpu.dot_dimension_numbers<[1], [0], [0], [1], [0, 0, 1, 1], [], []>} : vector<2x32xf32>, vector<32x4xf32>, vector<2x4xf32> -> vector<2x4xf32>
    %100 = arith.addf %95, %99 : vector<2x4xf32>
    %c0_63 = arith.constant 0 : index
    %c0_64 = arith.constant 0 : index
    %101 = vector.load %arg7[%c0_63, %c0_64] : memref<1x4xf32, #tpu.memory_space<vmem>>, vector<1x4xf32>
    %102 = vector.broadcast %101 : vector<1x4xf32> to vector<2x4xf32>
    %103 = arith.addf %100, %102 : vector<2x4xf32>
    %c0_65 = arith.constant 0 : index
    %c0_66 = arith.constant 0 : index
    %104 = vector.load %arg8[%c0_65, %c0_66] : memref<2x4xf32, #tpu.memory_space<vmem>>, vector<2x4xf32>
    tpu.vector_store %arg8[%c0_65, %c0_66], %103 {strides = array<i32>} : memref<2x4xf32, #tpu.memory_space<vmem>>, vector<2x4xf32>,
    return
  }
  func.func @transform_0(%arg0: i32) -> (i32, i32, i32) {
    %c0_i32 = arith.constant 0 : i32
    %c0_i32_0 = arith.constant 0 : i32
    %c0_i32_1 = arith.constant 0 : i32
    return %c0_i32, %arg0, %c0_i32_0 : i32, i32, i32
  }
  func.func @transform_1(%arg0: i32) -> (i32, i32) {
    %c0_i32 = arith.constant 0 : i32
    %c0_i32_0 = arith.constant 0 : i32
    %c0_i32_1 = arith.constant 0 : i32
    return %c0_i32, %c0_i32_0 : i32, i32
  }
  func.func @transform_2(%arg0: i32) -> (i32, i32) {
    %c0_i32 = arith.constant 0 : i32
    %c0_i32_0 = arith.constant 0 : i32
    %c0_i32_1 = arith.constant 0 : i32
    return %c0_i32, %c0_i32_0 : i32, i32
  }
  func.func @transform_3(%arg0: i32) -> (i32, i32) {
    %c0_i32 = arith.constant 0 : i32
    %c0_i32_0 = arith.constant 0 : i32
    %c0_i32_1 = arith.constant 0 : i32
    return %c0_i32, %c0_i32_0 : i32, i32
  }
  func.func @transform_4(%arg0: i32) -> (i32, i32) {
    %c0_i32 = arith.constant 0 : i32
    %c0_i32_0 = arith.constant 0 : i32
    %c0_i32_1 = arith.constant 0 : i32
    return %c0_i32, %c0_i32_0 : i32, i32
  }
  func.func @transform_5(%arg0: i32) -> (i32, i32, i32) {
    %c0_i32 = arith.constant 0 : i32
    %c0_i32_0 = arith.constant 0 : i32
    %c0_i32_1 = arith.constant 0 : i32
    %c0_i32_2 = arith.constant 0 : i32
    return %c0_i32, %c0_i32_0, %c0_i32_1 : i32, i32, i32
  }
  func.func @transform_6(%arg0: i32) -> (i32, i32) {
    %c0_i32 = arith.constant 0 : i32
    %c0_i32_0 = arith.constant 0 : i32
    %c0_i32_1 = arith.constant 0 : i32
    return %c0_i32, %c0_i32_0 : i32, i32
  }
  func.func @transform_7(%arg0: i32) -> (i32, i32) {
    %c0_i32 = arith.constant 0 : i32
    %c0_i32_0 = arith.constant 0 : i32
    return %arg0, %c0_i32 : i32, i32
  }
}

</mosaic_0001>

<bundles_post_ra>
// kernel: dqn_forward.1
= control target key start
LH: loop header
LB: loop body
LE: loop exit
PB: predicated region body
PF: predicated region fallthrough
CT: control target
= control target key end

     0   :  { %v2070_v7 = vmov 0.0   ;;  %v2071_v13 = vmov 0.0|0.0   ;;  %vm85_vm0 = vcmask 1040384   ;;  %s2665_s0 = inlined_call_operand.vmem [shape: f32[4,18,49], index: 0, kind: input, shape index: {}]   ;;  %s2666_s1 = inlined_call_operand.vmem [shape: f32[49,144], index: 1, kind: input, shape index: {}]   ;;  %s2667_s2 = inlined_call_operand.vmem [shape: f32[1,144], index: 2, kind: input, shape index: {}]   ;;  %s2668_s3 = inlined_call_operand.vmem [shape: f32[144,32], index: 3, kind: input, shape index: {}]   ;;  %s2669_s4 = inlined_call_operand.vmem [shape: f32[1,32], index: 4, kind: input, shape index: {}]   ;;  %s2670_s5 = inlined_call_operand.vmem [shape: f32[9,32,4], index: 5, kind: input, shape index: {}]   ;;  %s2671_s6 = inlined_call_operand.vmem [shape: f32[1,4], index: 6, kind: input, shape index: {}]   ;;  %s2672_s7 = inlined_call_operand.hbm [shape: f32[2,4], index: 7, kind: output, shape index: {}]  }
   0x1   :  { %v28_v0 = vld [vmem:[%s2666_s1 + $0x8] sm:$0xff]  ;;  %v30_v1 = vld [vmem:[%s2666_s1 + $0x18] sm:$0xff]  ;;  %v27_v2 = vld [vmem:[%s2666_s1] sm:$0xff]  ;;  %156 = vmatprep.mubr.f32.mxu0 %v2070_v7  ;;  %1844 = vmatprep.subr.bf16.mxu1 %v2071_v13 }
   0x2   :  { %v2123_v3 = vpack.c.bf16 %v30_v1, %v28_v0  ;;  %v29_v4 = vld [vmem:[%s2666_s1 + $0x10] sm:$0xff]  ;;  %v32_v5 = vld [vmem:[%s2666_s1 + $0x28] sm:$0xff]  ;;  %v34_v6 = vld [vmem:[%s2666_s1 + $0x38] sm:$0xff] }
   0x3   :  { %v2135_v8 = vpack.c.bf16 %v29_v4, %v27_v2  ;;  %v2137_v9 = vpack.c.bf16 %v34_v6, %v32_v5  ;;  %v31_v10 = vld [vmem:[%s2666_s1 + $0x20] sm:$0xff]  ;;  %v33_v11 = vld [vmem:[%s2666_s1 + $0x30] sm:$0xff]  ;;  %v36_v12 = vld [vmem:[%s2666_s1 + $0x48] sm:$0xff] }
   0x4   :  { %1833 = vmatprep.subr.bf16.mxu0 %v2123_v3  ;;  %v38_v14 = vld [vmem:[%s2666_s1 + $0x58] sm:$0xff]  ;;  %v2154_v15 = vpack.c.bf16 %v33_v11, %v31_v10  ;;  %v35_v17 = vld [vmem:[%s2666_s1 + $0x40] sm:$0xff]  ;;  %v37_v18 = vld [vmem:[%s2666_s1 + $0x50] sm:$0xff] }
   0x5   :  { %1835 = vmatpush1.bf16.msra.mxu0 %v2135_v8  ;;  %v2157_v16 = vpack.c.bf16 %v38_v14, %v36_v12  ;;  %v42_v19 = vld [vmem:[%s2668_s3] sm:$0xff]  ;;  %v43_v20 = vld [vmem:[%s2668_s3 + $0x8] sm:$0xff]  ;;  %v44_v21 = vld [vmem:[%s2668_s3 + $0x10] sm:$0xff]  ;;  %v2178_v23 = vpack.c.bf16 %v37_v18, %v35_v17 }
   0x6   :  { %1837 = vmatprep.subr.bf16.mxu0 %v2137_v9  ;;  %v45_v22 = vld [vmem:[%s2668_s3 + $0x18] sm:$0xff]  ;;  %v2180_v24 = vpack.c.bf16 %v43_v20, %v42_v19  ;;  %v2186_v25 = vld [vmem:[%s2666_s1 + $0x68] sm:$0x1]  ;;  %v46_v27 = vld [vmem:[%s2668_s3 + $0x20] sm:$0xff] }
   0x7   :  { %v2189_v26 = vpack.c.bf16 %v45_v22, %v44_v21  ;;  %v47_v28 = vld [vmem:[%s2668_s3 + $0x28] sm:$0xff] }
   0x8   :  { %1846 = vmatpush1.bf16.msra.mxu1 %v2180_v24 }
   0x9   :  { %1839 = vmatpush1.bf16.msra.mxu0 %v2154_v15  ;;  %1847 = vmatprep.subr.bf16.mxu1 %v2071_v13 }
   0xa   :  { %1841 = vmatprep.subr.bf16.mxu0 %v2157_v16 }
   0xd   :  { %1843 = vmatpush1.bf16.msra.mxu0 %v2178_v23 }
   0xe   :  { %12 = vsyncpa [#allocation3], 0  ;;  %1604 = vmatprep.subr.msk.mxu0 %vm85_vm0, %v2186_v25  ;;  %v2204_v29 = vld [vmem:[%s2666_s1 + $0x60] sm:$0x1]  ;;  %vm75_vm1 = vcmask 400384   ;;  %1849 = vmatpush1.bf16.msra.mxu1 %v2189_v26  ;;  %v2211_v31 = vpack.c.bf16 %v47_v28, %v46_v27  ;;  %v48_v32 = vld [vmem:[%s2668_s3 + $0x30] sm:$0xff]  ;;  %v65_v55 = vlaneseq }
   0xf   :  { %v61_v30 = vld [vmem:[%s2665_s0] sm:$0xff]  ;;  %1850 = vmatprep.subr.bf16.mxu1 %v2071_v13  ;;  %v49_v33 = vld [vmem:[%s2668_s3 + $0x38] sm:$0xff]  ;;  %v62_v34 = vld [vmem:[%s2665_s0 + $0x8] sm:$0xff]  ;;  %vm187_vm2 = vcmask 130048   ;;  %vm2072_vm3 = vmmov 0   ;;  %vm882_vm4 = vcmask 261120  }
  0x10   :  { %v2230_v35 = vpack.c.bf16 %v49_v33, %v48_v32  ;;  %v50_v36 = vld [vmem:[%s2668_s3 + $0x40] sm:$0xff]  ;;  %v51_v37 = vld [vmem:[%s2668_s3 + $0x48] sm:$0xff]  ;;  %v63_v38 = vld [vmem:[%s2665_s0 + $0x10] sm:$0x3]  ;;  %v66_v56 = vshrl.u32 %v65_v55, 7  ;;  %s2073_s9 = smov [#allocation2]  }
  0x11   :  { %1605 = vmatpush1.msk.msra.mxu0 %vm85_vm0, %v2204_v29  ;;  %v2247_v39 = vpack.c.bf16 %v51_v37, %v50_v36  ;;  %v52_v40 = vld [vmem:[%s2668_s3 + $0x50] sm:$0xff]  ;;  %v53_v41 = vld [vmem:[%s2668_s3 + $0x58] sm:$0xff]  ;;  %v54_v44 = vld [vmem:[%s2668_s3 + $0x60] sm:$0xff]  ;;  %s1596_s10 = sshll.u32 %s2073_s9, 4  ;;  %vm1588_vm5 = vcmask 25600   ;;  %s1597_s10 = int_to_ptr.vmem [resolvable:$true] %s1596_s10 }
  0x12   :  { %1606 = vmatmul.mubr.msk.f32.vlgmr.msra.gmra.mrb[0].mxu0 %vm75_vm1, %v61_v30  ;;  %1872 = vmatprep.subr.bf16.mxu0 %v2123_v3  ;;  %v1613_v42 = vld [vmem:[%s2665_s0 + $0x18] sm:$0xff]  ;;  %v2266_v43 = vpack.c.bf16 %v53_v41, %v52_v40  ;;  %v55_v45 = vld [vmem:[%s2668_s3 + $0x68] sm:$0xff]  ;;  %v1614_v46 = vld [vmem:[%s2665_s0 + $0x20] sm:$0xff]  ;;  %v67_v57 = vsub.s32 0, %v66_v56  ;;  %v71_v59 = vsub.s32 1, %v66_v56  ;;  %s2046_s11 = scalar_lea.vmem %s1597_s10, 32  ;;  %p2051_p1 = scmp.lt.s32.totalorder %s1597_s10, %s1597_s10 }
  0x13   :  { %1874 = vmatpush1.bf16.msra.mxu0 %v2135_v8  ;;  %162 = vmatprep.mubr.f32.mxu0 %v2070_v7  ;;  %v2285_v47 = vpack.c.bf16 %v55_v45, %v54_v44  ;;  %v56_v48 = vld [vmem:[%s2668_s3 + $0x70] sm:$0xff]  ;;  %v57_v49 = vld [vmem:[%s2668_s3 + $0x78] sm:$0xff]  ;;  %v1615_v50 = vld [vmem:[%s2665_s0 + $0x28] sm:$0x3]  ;;  %p2047_p0 = scmp.ne.s32.totalorder %s1597_s10, %s2046_s11  ;;  %p2052_p2 = scmp.lt.s32.totalorder %s2046_s11, %s2046_s11 }
  0x14   :  { %1876 = vmatprep.subr.bf16.mxu0 %v2137_v9  ;;  %1852 = vmatpush1.bf16.msra.mxu1 %v2211_v31  ;;  %v2302_v51 = vpack.c.bf16 %v57_v49, %v56_v48  ;;  %v58_v52 = vld [vmem:[%s2668_s3 + $0x80] sm:$0xff]  ;;  %v59_v53 = vld [vmem:[%s2668_s3 + $0x88] sm:$0xff]  ;;  %v1625_v45 = vld [vmem:[%s2665_s0 + $0x38] sm:$0xff] }
  0x15   :  { %1853 = vmatprep.subr.bf16.mxu1 %v2071_v13  ;;  %v2326_v54 = vpack.c.bf16 %v59_v53, %v58_v52  ;;  %v41_v58 = vld [vmem:[%s2667_s2] sm:$0x3]  ;;  %p2053_p3 = por %p2052_p2, %p2051_p1 }
  0x16   :  { %1607 = vmatmul.mubr.msk.f32.gmra.mrb[2].mxu0 %vm75_vm1, %v62_v34  ;;  %v2335_v60 = vrot.slane %v41_v58, %v67_v57  ;;  %v2337_v61 = vrot.slane %v41_v58, %v71_v59  ;;  %v1624_v34 = vld [vmem:[%s2665_s0 + $0x30] sm:$0xff] }
  0x17   :  { %1878 = vmatpush1.bf16.msra.mxu0 %v2154_v15  ;;  %168 = vmatprep.mubr.f32.mxu0 %v2070_v7  ;;  %p2054_p4 = pnand %p2053_p3, %p2047_p0 }
  0x18   :  { %1880 = vmatprep.subr.bf16.mxu0 %v2157_v16  ;;  %1855 = vmatpush1.bf16.msra.mxu1 %v2230_v35 }
  0x19   :  { %1856 = vmatprep.subr.bf16.mxu1 %v2071_v13 }
  0x1a   :  { %1608 = vmatmul.mubr.msk.f32.gmra.mrb[4].mxu0 %vm75_vm1, %v63_v38 }
  0x1b   :  { %1882 = vmatpush1.bf16.msra.mxu0 %v2178_v23  ;;  %357 = vmatprep.mubr.f32.mxu0 %v2070_v7 }
  0x1c   :  { %1616 = vmatprep.subr.msk.mxu0 %vm85_vm0, %v2186_v25  ;;  %1858 = vmatpush1.bf16.msra.mxu1 %v2247_v39 }
  0x1d   :  { %1859 = vmatprep.subr.bf16.mxu1 %v2071_v13 }
  0x1f   :  { %1617 = vmatpush1.msk.msra.mxu0 %vm85_vm0, %v2204_v29 }
  0x20   :  { %1618 = vmatmul.mubr.msk.f32.vlgmr.msra.gmra.mrb[6].mxu0 %vm75_vm1, %v1613_v42  ;;  %1883 = vmatprep.subr.bf16.mxu0 %v2071_v13 }
  0x21   :  { %363 = vmatprep.mubr.f32.mxu0 %v2070_v7  ;;  %1885 = vmatpush1.bf16.msra.mxu0 %v2180_v24 }
  0x22   :  { %1886 = vmatprep.subr.bf16.mxu0 %v2071_v13  ;;  %1861 = vmatpush1.bf16.msra.mxu1 %v2266_v43 }
  0x23   :  { %1862 = vmatprep.subr.bf16.mxu1 %v2071_v13 }
  0x24   :  { %1619 = vmatmul.mubr.msk.f32.gmra.mrb[8].mxu0 %vm75_vm1, %v1614_v46 }
  0x25   :  { %369 = vmatprep.mubr.f32.mxu0 %v2070_v7  ;;  %1888 = vmatpush1.bf16.msra.mxu0 %v2189_v26 }
  0x26   :  { %1889 = vmatprep.subr.bf16.mxu0 %v2071_v13  ;;  %1864 = vmatpush1.bf16.msra.mxu1 %v2285_v47 }
  0x27   :  { %1865 = vmatprep.subr.bf16.mxu1 %v2071_v13 }
  0x28   :  { %1620 = vmatmul.mubr.msk.f32.gmra.mrb[10].mxu0 %vm75_vm1, %v1615_v50 }
  0x29   :  { %1891 = vmatpush1.bf16.msra.mxu0 %v2211_v31 }
  0x2a   :  { %1892 = vmatprep.subr.bf16.mxu0 %v2071_v13  ;;  %1867 = vmatpush1.bf16.msra.mxu1 %v2302_v51 }
  0x2b   :  { %1868 = vmatprep.subr.bf16.mxu1 %v2071_v13 }
  0x2d   :  { %1894 = vmatpush1.bf16.msra.mxu0 %v2230_v35 }
  0x2e   :  { %1895 = vmatprep.subr.bf16.mxu0 %v2071_v13  ;;  %1870 = vmatpush1.bf16.msra.mxu1 %v2326_v54 }
  0x2f   :  { %1911 = vmatprep.subr.bf16.mxu1 %v2123_v3 }
  0x31   :  { %1897 = vmatpush1.bf16.msra.mxu0 %v2247_v39 }
  0x32   :  { %1898 = vmatprep.subr.bf16.mxu0 %v2071_v13 }
  0x35   :  { %1900 = vmatpush1.bf16.msra.mxu0 %v2266_v43 }
  0x36   :  { %1901 = vmatprep.subr.bf16.mxu0 %v2071_v13 }
  0x39   :  { %1903 = vmatpush1.bf16.msra.mxu0 %v2285_v47 }
  0x3a   :  { %1904 = vmatprep.subr.bf16.mxu0 %v2071_v13 }
  0x3d   :  { %1906 = vmatpush1.bf16.msra.mxu0 %v2302_v51 }
  0x3e   :  { %1907 = vmatprep.subr.bf16.mxu0 %v2071_v13 }
  0x41   :  { %1909 = vmatpush1.bf16.msra.mxu0 %v2326_v54 }
  0x42   :  { %1950 = vmatprep.subr.bf16.mxu0 %v2123_v3 }
  0xe5   :  { %v158_v62 = vpop.f32.mrb[0].mxu0 }
  0xe6   :  { %v159_v63 = vadd.f32 %v158_v62, %v2335_v60  ;;  %v160_v0 = vpop.f32.mrb[1].mxu0 }
  0xe7   :  { %v161_v1 = vadd.f32 %v160_v0, %v2337_v61 }
  0xe8   :  { %v175_v2 = vmax.f32 %v159_v63, 0.0 }
  0xe9   :  { %v176_v3 = vmax.f32 %v161_v1, 0.0  ;;  %v164_v4 = vpop.f32.mrb[2].mxu0 }
  0xea   :  { %v165_v5 = vadd.f32 %v164_v4, %v2335_v60  ;;  %v166_v6 = vpop.f32.mrb[3].mxu0 }
  0xeb   :  { %v167_v10 = vadd.f32 %v166_v6, %v2337_v61  ;;  %1610 = vmatprep.mubr.msk.f32.mxu1 %vm187_vm2, %v176_v3 }
  0xec   :  { %v177_v11 = vmax.f32 %v165_v5, 0.0  ;;  %262 = vmatmul.mubr.f32.vlgmr.msra.gmra.mrb[0].mxu1 %v175_v2 }
  0xed   :  { %v178_v12 = vmax.f32 %v167_v10, 0.0  ;;  %1913 = vmatpush1.bf16.msra.mxu1 %v2135_v8  ;;  %v170_v14 = vpop.f32.mrb[4].mxu0 }
  0xee   :  { %v171_v17 = vadd.f32 %v170_v14, %v2335_v60  ;;  %v172_v18 = vpop.f32.mrb[5].mxu0  ;;  %1915 = vmatprep.subr.bf16.mxu1 %v2137_v9 }
  0xef   :  { %v173_v19 = vadd.f32 %v172_v18, %v2337_v61  ;;  %1611 = vmatprep.mubr.msk.f32.mxu1 %vm187_vm2, %v178_v12 }
  0xf0   :  { %v179_v20 = vmax.f32 %v171_v17, 0.0  ;;  %267 = vmatmul.mubr.f32.gmra.mrb[2].mxu1 %v177_v11 }
  0xf1   :  { %v180_v21 = vmax.f32 %v173_v19, 0.0  ;;  %1917 = vmatpush1.bf16.msra.mxu1 %v2154_v15 }
  0xf2   :  { %1919 = vmatprep.subr.bf16.mxu1 %v2157_v16 }
  0xf3   :  { %1612 = vmatprep.mubr.msk.f32.mxu1 %vm187_vm2, %v180_v21  ;;  %v359_v22 = vpop.f32.mrb[6].mxu0 }
  0xf4   :  { %v360_v27 = vadd.f32 %v359_v22, %v2335_v60  ;;  %272 = vmatmul.mubr.f32.gmra.mrb[4].mxu1 %v179_v20  ;;  %v361_v28 = vpop.f32.mrb[7].mxu0 }
  0xf5   :  { %v362_v30 = vadd.f32 %v361_v28, %v2337_v61  ;;  %1921 = vmatpush1.bf16.msra.mxu1 %v2178_v23  ;;  %554 = vmatprep.mubr.f32.mxu1 %v2070_v7 }
  0xf6   :  { %1627 = vmatprep.subr.msk.mxu1 %vm85_vm0, %v2186_v25  ;;  %v376_v36 = vmax.f32 %v360_v27, 0.0 }
  0xf7   :  { %v377_v32 = vmax.f32 %v362_v30, 0.0  ;;  %v365_v33 = vpop.f32.mrb[8].mxu0 }
  0xf8   :  { %v366_v37 = vadd.f32 %v365_v33, %v2335_v60  ;;  %v367_v38 = vpop.f32.mrb[9].mxu0 }
  0xf9   :  { %v368_v40 = vadd.f32 %v367_v38, %v2337_v61  ;;  %1628 = vmatpush1.msk.msra.mxu1 %vm85_vm0, %v2204_v29  ;;  %1621 = vmatprep.mubr.msk.f32.mxu0 %vm187_vm2, %v377_v32 }
  0xfa   :  { %v378_v41 = vmax.f32 %v366_v37, 0.0  ;;  %1629 = vmatmul.mubr.msk.f32.vlgmr.msra.gmra.mrb[6].mxu1 %vm75_vm1, %v1624_v34  ;;  %456 = vmatmul.mubr.f32.vlgmr.msra.gmra.mrb[12].mxu0 %v376_v36 }
  0xfb   :  { %v379_v42 = vmax.f32 %v368_v40, 0.0  ;;  %1952 = vmatpush1.bf16.msra.mxu0 %v2135_v8  ;;  %v371_v44 = vpop.f32.mrb[10].mxu0  ;;  %560 = vmatprep.mubr.f32.mxu1 %v2070_v7 }
  0xfc   :  { %v372_v46 = vadd.f32 %v371_v44, %v2335_v60  ;;  %v373_v48 = vpop.f32.mrb[11].mxu0  ;;  %1954 = vmatprep.subr.bf16.mxu0 %v2137_v9  ;;  %1922 = vmatprep.subr.bf16.mxu1 %v2071_v13  ;;  %v1626_v9 = vld [vmem:[%s2665_s0 + $0x40] sm:$0x3] }
  0xfd   :  { %v374_v49 = vadd.f32 %v373_v48, %v2337_v61  ;;  %1622 = vmatprep.mubr.msk.f32.mxu0 %vm187_vm2, %v379_v42  ;;  %1924 = vmatpush1.bf16.msra.mxu1 %v2180_v24 }
  0xfe   :  { %v380_v8 = vmax.f32 %v372_v46, 0.0  ;;  %1630 = vmatmul.mubr.msk.f32.gmra.mrb[8].mxu1 %vm75_vm1, %v1625_v45  ;;  %461 = vmatmul.mubr.f32.gmra.mrb[14].mxu0 %v378_v41 }
  0xff   :  { %v381_v50 = vmax.f32 %v374_v49, 0.0  ;;  %1956 = vmatpush1.bf16.msra.mxu0 %v2154_v15  ;;  %566 = vmatprep.mubr.f32.mxu1 %v2070_v7  ;;  %v1635_v15 = vld [vmem:[%s2665_s0 + $0x48] sm:$0xff] }
 0x100   :  { %1958 = vmatprep.subr.bf16.mxu0 %v2157_v16  ;;  %1925 = vmatprep.subr.bf16.mxu1 %v2071_v13  ;;  %v1636_v16 = vld [vmem:[%s2665_s0 + $0x50] sm:$0xff] }
 0x101   :  { %1623 = vmatprep.mubr.msk.f32.mxu0 %vm187_vm2, %v381_v50  ;;  %1927 = vmatpush1.bf16.msra.mxu1 %v2189_v26 }
 0x102   :  { %1631 = vmatmul.mubr.msk.f32.gmra.mrb[10].mxu1 %vm75_vm1, %v1626_v9  ;;  %466 = vmatmul.mubr.f32.gmra.mrb[16].mxu0 %v380_v8 }
 0x103   :  { %1960 = vmatpush1.bf16.msra.mxu0 %v2178_v23  ;;  %751 = vmatprep.mubr.f32.mxu0 %v2070_v7  ;;  %v1637_v23 = vld [vmem:[%s2665_s0 + $0x58] sm:$0x3] }
 0x104   :  { %1638 = vmatprep.subr.msk.mxu0 %vm85_vm0, %v2186_v25  ;;  %1928 = vmatprep.subr.bf16.mxu1 %v2071_v13 }
 0x105   :  { %1930 = vmatpush1.bf16.msra.mxu1 %v2211_v31 }
 0x106   :  { %1931 = vmatprep.subr.bf16.mxu1 %v2071_v13 }
 0x107   :  { %1639 = vmatpush1.msk.msra.mxu0 %vm85_vm0, %v2204_v29 }
 0x108   :  { %1640 = vmatmul.mubr.msk.f32.vlgmr.msra.gmra.mrb[18].mxu0 %vm75_vm1, %v1635_v15  ;;  %1961 = vmatprep.subr.bf16.mxu0 %v2071_v13 }
 0x109   :  { %757 = vmatprep.mubr.f32.mxu0 %v2070_v7  ;;  %1933 = vmatpush1.bf16.msra.mxu1 %v2230_v35 }
 0x10a   :  { %1963 = vmatpush1.bf16.msra.mxu0 %v2180_v24  ;;  %1934 = vmatprep.subr.bf16.mxu1 %v2071_v13 }
 0x10b   :  { %1964 = vmatprep.subr.bf16.mxu0 %v2071_v13 }
 0x10c   :  { %1641 = vmatmul.mubr.msk.f32.gmra.mrb[20].mxu0 %vm75_vm1, %v1636_v16 }
 0x10d   :  { %763 = vmatprep.mubr.f32.mxu0 %v2070_v7  ;;  %1936 = vmatpush1.bf16.msra.mxu1 %v2247_v39 }
 0x10e   :  { %1966 = vmatpush1.bf16.msra.mxu0 %v2189_v26  ;;  %1937 = vmatprep.subr.bf16.mxu1 %v2071_v13 }
 0x10f   :  { %1967 = vmatprep.subr.bf16.mxu0 %v2071_v13 }
 0x110   :  { %1642 = vmatmul.mubr.msk.f32.gmra.mrb[22].mxu0 %vm75_vm1, %v1637_v23 }
 0x111   :  { %1939 = vmatpush1.bf16.msra.mxu1 %v2266_v43 }
 0x112   :  { %1969 = vmatpush1.bf16.msra.mxu0 %v2211_v31  ;;  %1940 = vmatprep.subr.bf16.mxu1 %v2071_v13 }
 0x113   :  { %1970 = vmatprep.subr.bf16.mxu0 %v2071_v13 }
 0x115   :  { %1942 = vmatpush1.bf16.msra.mxu1 %v2285_v47 }
 0x116   :  { %1972 = vmatpush1.bf16.msra.mxu0 %v2230_v35  ;;  %1943 = vmatprep.subr.bf16.mxu1 %v2071_v13 }
 0x117   :  { %1973 = vmatprep.subr.bf16.mxu0 %v2071_v13 }
 0x119   :  { %1945 = vmatpush1.bf16.msra.mxu1 %v2302_v51 }
 0x11a   :  { %1975 = vmatpush1.bf16.msra.mxu0 %v2247_v39  ;;  %1946 = vmatprep.subr.bf16.mxu1 %v2071_v13  ;;  %v2446_v39 = vld [vmem:[%s2669_s4] ss:$0 sm:$0xff] }
 0x11b   :  { %1976 = vmatprep.subr.bf16.mxu0 %v2071_v13 }
 0x11d   :  { %1948 = vmatpush1.bf16.msra.mxu1 %v2326_v54 }
 0x11e   :  { %1978 = vmatpush1.bf16.msra.mxu0 %v2266_v43  ;;  %1988 = vmatprep.subr.bf16.mxu1 %v2071_v13 }
 0x11f   :  { %1979 = vmatprep.subr.bf16.mxu0 %v2071_v13 }
 0x122   :  { %1981 = vmatpush1.bf16.msra.mxu0 %v2285_v47 }
 0x123   :  { %1982 = vmatprep.subr.bf16.mxu0 %v2071_v13 }
 0x126   :  { %1984 = vmatpush1.bf16.msra.mxu0 %v2302_v51 }
 0x127   :  { %1985 = vmatprep.subr.bf16.mxu0 %v2071_v13 }
 0x12a   :  { %1987 = vmatpush1.bf16.msra.mxu0 %v2326_v54 }
 0x12b   :  { %2012 = vmatprep.subr.bf16.mxu0 %v2071_v13 }
 0x1bf   :  { %v263_v24 = vpop.f32.mrb[0].mxu1 }
 0x1c0   :  { %v265_v25 = vpop.f32.mrb[1].mxu1  ;;  %v264_v43 = vadd.f32 %v2446_v39, %v263_v24 }
 0x1c2   :  { %v277_v57 = vmax.f32 %v264_v43, 0.0  ;;  %v1663_v43 = vld [vmem:[%s2670_s5 + $0x88] sm:$0xff] }
 0x1c3   :  { %v268_v26 = vpop.f32.mrb[2].mxu1 }
 0x1c4   :  { %v270_v29 = vpop.f32.mrb[3].mxu1  ;;  %v269_v58 = vadd.f32 %v2446_v39, %v268_v26 }
 0x1c6   :  { %v278_v11 = vmax.f32 %v269_v58, 0.0 }
 0x1c7   :  { %v273_v31 = vpop.f32.mrb[4].mxu1 }
 0x1c8   :  { %v275_v35 = vpop.f32.mrb[5].mxu1  ;;  %v274_v12 = vadd.f32 %v2446_v39, %v273_v31  ;;  %v1646_v31 = vld [vmem:[%s2670_s5 + $0x20] sm:$0xff] }
 0x1c9   :  { %v1647_v35 = vld [vmem:[%s2670_s5 + $0x28] sm:$0xff] }
 0x1ca   :  { %v279_v33 = vmax.f32 %v274_v12, 0.0 }
 0x1cd   :  { %v556_v47 = vpop.f32.mrb[6].mxu1  ;;  %v457_v51 = vpop.f32.mrb[12].mxu0 }
 0x1ce   :  { %v557_v52 = vadd.f32 %v556_v47, %v2335_v60  ;;  %v458_v53 = vadd.f32 %v2446_v39, %v457_v51  ;;  %v558_v54 = vpop.f32.mrb[7].mxu1  ;;  %v459_v55 = vpop.f32.mrb[13].mxu0  ;;  %v1648_v51 = vld [vmem:[%s2670_s5 + $0x30] sm:$0xff] }
 0x1cf   :  { %v559_v56 = vadd.f32 %v558_v54, %v2337_v61  ;;  %v1664_v54 = vld [vmem:[%s2670_s5 + $0x90] sm:$0xff]  ;;  %v1665_v55 = vld [vmem:[%s2670_s5 + $0x98] sm:$0xff] }
 0x1d0   :  { %v573_v59 = vmax.f32 %v557_v52, 0.0  ;;  %v471_v62 = vmax.f32 %v458_v53, 0.0  ;;  %v1649_v52 = vld [vmem:[%s2670_s5 + $0x38] sm:$0xff] }
 0x1d1   :  { %v574_v63 = vmax.f32 %v559_v56, 0.0  ;;  %v562_v0 = vpop.f32.mrb[8].mxu1  ;;  %v462_v1 = vpop.f32.mrb[14].mxu0  ;;  %v1992_v53 = vpack.c.bf16 %v1649_v52, %v1648_v51  ;;  %v2016_v56 = vpack.c.bf16 %v1665_v55, %v1664_v54  ;;  %v1658_v51 = vld [vmem:[%s2670_s5 + $0x68] sm:$0xff]  ;;  %v1659_v55 = vld [vmem:[%s2670_s5 + $0x70] sm:$0xff] }
 0x1d2   :  { %v2453_v2 = vmax.f32 %v277_v57, %v471_v62  ;;  %v563_v3 = vadd.f32 %v562_v0, %v2335_v60  ;;  %v463_v4 = vadd.f32 %v2446_v39, %v462_v1  ;;  %v564_v5 = vpop.f32.mrb[9].mxu1  ;;  %v464_v6 = vpop.f32.mrb[15].mxu0 }
 0x1d3   :  { %v565_v10 = vadd.f32 %v564_v5, %v2337_v61  ;;  %1632 = vmatprep.mubr.msk.f32.mxu1 %vm187_vm2, %v574_v63 }
 0x1d4   :  { %v575_v14 = vmax.f32 %v563_v3, 0.0  ;;  %v472_v17 = vmax.f32 %v463_v4, 0.0  ;;  %653 = vmatmul.mubr.f32.vlgmr.msra.gmra.mrb[12].mxu1 %v573_v59 }
 0x1d5   :  { %v576_v18 = vmax.f32 %v565_v10, 0.0  ;;  %v568_v19 = vpop.f32.mrb[10].mxu1  ;;  %v467_v20 = vpop.f32.mrb[16].mxu0 }
 0x1d6   :  { %v2460_v21 = vmax.f32 %v278_v11, %v472_v17  ;;  %v569_v22 = vadd.f32 %v568_v19, %v2335_v60  ;;  %v468_v27 = vadd.f32 %v2446_v39, %v467_v20  ;;  %v570_v28 = vpop.f32.mrb[11].mxu1  ;;  %v469_v30 = vpop.f32.mrb[17].mxu0 }
 0x1d7   :  { %v571_v32 = vadd.f32 %v570_v28, %v2337_v61  ;;  %1633 = vmatprep.mubr.msk.f32.mxu1 %vm187_vm2, %v576_v18 }
 0x1d8   :  { %v577_v34 = vmax.f32 %v569_v22, 0.0  ;;  %v473_v36 = vmax.f32 %v468_v27, 0.0  ;;  %658 = vmatmul.mubr.f32.gmra.mrb[14].mxu1 %v575_v14  ;;  %v872_v22 = vld [vmem:[%s2670_s5 + $0x8] sm:$0xff] }
 0x1d9   :  { %v578_v37 = vmax.f32 %v571_v32, 0.0  ;;  %v1672_v32 = vld [vmem:[%s2670_s5 + $0xc0] sm:$0xff] }
 0x1da   :  { %v2466_v38 = vmax.f32 %v279_v33, %v473_v36  ;;  %v1673_v33 = vld [vmem:[%s2670_s5 + $0xc8] sm:$0xff] }
 0x1db   :  { %1634 = vmatprep.mubr.msk.f32.mxu1 %vm187_vm2, %v578_v37  ;;  %v753_v40 = vpop.f32.mrb[18].mxu0 }
 0x1dc   :  { %v754_v41 = vadd.f32 %v753_v40, %v2335_v60  ;;  %663 = vmatmul.mubr.f32.gmra.mrb[16].mxu1 %v577_v34  ;;  %v755_v42 = vpop.f32.mrb[19].mxu0  ;;  %v874_v40 = vld [vmem:[%s2670_s5 + $0x18] sm:$0xff] }
 0x1dd   :  { %v756_v44 = vadd.f32 %v755_v42, %v2337_v61  ;;  %1741 = vmatprep.mubr.msk.f32.mxu1 %vm2072_vm3, %v2070_v7  ;;  %v2025_v42 = vpack.c.bf16 %v1673_v33, %v1672_v32 }
 0x1de   :  { %v770_v48 = vmax.f32 %v754_v41, 0.0 }
 0x1df   :  { %v771_v45 = vmax.f32 %v756_v44, 0.0  ;;  %v759_v46 = vpop.f32.mrb[20].mxu0 }
 0x1e0   :  { %v760_v49 = vadd.f32 %v759_v46, %v2335_v60  ;;  %v761_v8 = vpop.f32.mrb[21].mxu0  ;;  %v1674_v46 = vld [vmem:[%s2670_s5 + $0xd0] sm:$0xff] }
 0x1e1   :  { %v762_v50 = vadd.f32 %v761_v8, %v2337_v61  ;;  %1643 = vmatprep.mubr.msk.f32.mxu0 %vm187_vm2, %v771_v45 }
 0x1e2   :  { %v772_v9 = vmax.f32 %v760_v49, 0.0  ;;  %850 = vmatmul.mubr.f32.vlgmr.msra.gmra.mrb[24].mxu0 %v770_v48  ;;  %v1675_v48 = vld [vmem:[%s2670_s5 + $0xd8] sm:$0xff] }
 0x1e3   :  { %v773_v15 = vmax.f32 %v762_v50, 0.0  ;;  %v765_v16 = vpop.f32.mrb[22].mxu0 }
 0x1e4   :  { %v766_v23 = vadd.f32 %v765_v16, %v2335_v60  ;;  %v767_v24 = vpop.f32.mrb[23].mxu0  ;;  %v1989_v60 = vpack.c.bf16 %v1647_v35, %v1646_v31 }
 0x1e5   :  { %v768_v25 = vadd.f32 %v767_v24, %v2337_v61  ;;  %1644 = vmatprep.mubr.msk.f32.mxu0 %vm187_vm2, %v773_v15  ;;  %v1662_v61 = vld [vmem:[%s2670_s5 + $0x80] sm:$0xff]  ;;  %v2028_v15 = vpack.c.bf16 %v1675_v48, %v1674_v46  ;;  %v1683_v24 = vld [vmem:[%s2670_s5 + $0x108] sm:$0xff] }
 0x1e6   :  { %v774_v26 = vmax.f32 %v766_v23, 0.0  ;;  %855 = vmatmul.mubr.f32.gmra.mrb[26].mxu0 %v772_v9  ;;  %1990 = vmatpush3.bf16.msra.mxu1 %v1989_v60  ;;  %v2013_v47 = vpack.c.bf16 %v1663_v43, %v1662_v61  ;;  %v1653_v9 = vld [vmem:[%s2670_s5 + $0x48] sm:$0xff]  ;;  %v1682_v23 = vld [vmem:[%s2670_s5 + $0x100] sm:$0xff]  ;;  %v1684_v60 = vld [vmem:[%s2670_s5 + $0x110] sm:$0xff] }
 0x1e7   :  { %v775_v29 = vmax.f32 %v768_v25, 0.0  ;;  %1991 = vmatprep.subr.bf16.mxu1 %v2071_v13  ;;  %v2037_v31 = vpack.c.bf16 %v1683_v24, %v1682_v23  ;;  %v1685_v61 = vld [vmem:[%s2670_s5 + $0x118] sm:$0xff] }
 0x1e8   :  { %2014 = vmatpush3.bf16.msra.mxu0 %v2013_v47  ;;  %v1657_v47 = vld [vmem:[%s2670_s5 + $0x60] sm:$0xff]  ;;  %v2040_v52 = vpack.c.bf16 %v1685_v61, %v1684_v60 }
 0x1e9   :  { %1645 = vmatprep.mubr.msk.f32.mxu0 %vm187_vm2, %v775_v29  ;;  %2015 = vmatprep.subr.bf16.mxu0 %v2071_v13  ;;  %v1655_v29 = vld [vmem:[%s2670_s5 + $0x58] sm:$0xff] }
 0x1ea   :  { %860 = vmatmul.mubr.f32.gmra.mrb[28].mxu0 %v774_v26  ;;  %1993 = vmatpush3.bf16.msra.mxu1 %v1992_v53  ;;  %v1654_v26 = vld [vmem:[%s2670_s5 + $0x50] sm:$0xff]  ;;  %v2007_v53 = vpack.c.bf16 %v1658_v51, %v1657_v47 }
 0x1eb   :  { %1994 = vmatprep.subr.bf16.mxu1 %v2071_v13  ;;  %1785 = vmatprep.mubr.msk.f32.mxu0 %vm2072_vm3, %v2070_v7  ;;  %v2004_v43 = vpack.c.bf16 %v1655_v29, %v1654_v26 }
 0x1ec   :  { %2017 = vmatpush3.bf16.msra.mxu0 %v2016_v56  ;;  %v1660_v56 = vld [vmem:[%s2670_s5 + $0x78] sm:$0xff] }
 0x1ed   :  { %2024 = vmatprep.subr.bf16.mxu0 %v2071_v13 }
 0x2a7   :  { %v654_v57 = vpop.f32.mrb[12].mxu1 }
 0x2a8   :  { %v655_v58 = vadd.f32 %v2446_v39, %v654_v57  ;;  %v656_v59 = vpop.f32.mrb[13].mxu1  ;;  %v2010_v57 = vpack.c.bf16 %v1660_v56, %v1659_v55 }
 0x2a9   :  { %v1668_v59 = vld [vmem:[%s2670_s5 + $0xa8] sm:$0xff] }
 0x2aa   :  { %v668_v62 = vmax.f32 %v655_v58, 0.0  ;;  %v1667_v58 = vld [vmem:[%s2670_s5 + $0xa0] sm:$0xff] }
 0x2ab   :  { %v659_v63 = vpop.f32.mrb[14].mxu1 }
 0x2ac   :  { %v671_v0 = vmax.f32 %v2453_v2, %v668_v62  ;;  %v660_v1 = vadd.f32 %v2446_v39, %v659_v63  ;;  %v661_v3 = vpop.f32.mrb[15].mxu1  ;;  %v871_v2 = vld [vmem:[%s2670_s5] sm:$0xff]  ;;  %v2019_v62 = vpack.c.bf16 %v1668_v59, %v1667_v58 }
 0x2ad   :  { %v1995_v34 = vpack.c.bf16 %v872_v22, %v871_v2 }
 0x2ae   :  { %v669_v4 = vmax.f32 %v660_v1, 0.0  ;;  %v1670_v1 = vld [vmem:[%s2670_s5 + $0xb8] sm:$0xff] }
 0x2af   :  { %v664_v5 = vpop.f32.mrb[16].mxu1 }
 0x2b0   :  { %v672_v6 = vmax.f32 %v2460_v21, %v669_v4  ;;  %v665_v10 = vadd.f32 %v2446_v39, %v664_v5  ;;  %v666_v11 = vpop.f32.mrb[17].mxu1  ;;  %v1677_v4 = vld [vmem:[%s2670_s5 + $0xe0] sm:$0xff]  ;;  %v1678_v5 = vld [vmem:[%s2670_s5 + $0xe8] sm:$0xff] }
 0x2b1   :  { %v1679_v11 = vld [vmem:[%s2670_s5 + $0xf0] sm:$0xff] }
 0x2b2   :  { %v670_v12 = vmax.f32 %v665_v10, 0.0 }
 0x2b4   :  { %v673_v14 = vmax.f32 %v2466_v38, %v670_v12  ;;  %v873_v38 = vld [vmem:[%s2670_s5 + $0x10] sm:$0xff]  ;;  %v1680_v12 = vld [vmem:[%s2670_s5 + $0xf8] sm:$0xff] }
 0x2b5   :  { %v851_v17 = vpop.f32.mrb[24].mxu0  ;;  %v1998_v8 = vpack.c.bf16 %v874_v40, %v873_v38 }
 0x2b6   :  { %v852_v18 = vadd.f32 %v2446_v39, %v851_v17  ;;  %v853_v19 = vpop.f32.mrb[25].mxu0 }
 0x2b8   :  { %v865_v20 = vmax.f32 %v852_v18, 0.0 }
 0x2b9   :  { %v856_v21 = vpop.f32.mrb[26].mxu0 }
 0x2ba   :  { %v2523_v27 = vmax.f32 %v671_v0, %v865_v20  ;;  %v857_v28 = vadd.f32 %v2446_v39, %v856_v21  ;;  %v858_v30 = vpop.f32.mrb[27].mxu0  ;;  %v1669_v0 = vld [vmem:[%s2670_s5 + $0xb0] sm:$0xff] }
 0x2bb   :  { %v2022_v3 = vpack.c.bf16 %v1670_v1, %v1669_v0 }
 0x2bc   :  { %v881_v36 = vrot.slane %v2523_v27, 2  ;;  %v866_v37 = vmax.f32 %v857_v28, 0.0  ;;  %v1032_v54 = vrot.slane %v2523_v27, 4  ;;  %v1111_v63 = vrot.slane %v2523_v27, 6 }
 0x2bd   :  { %v861_v41 = vpop.f32.mrb[28].mxu0 }
 0x2be   :  { %v2539_v44 = vmax.f32 %v672_v6, %v866_v37  ;;  %v862_v45 = vadd.f32 %v2446_v39, %v861_v41  ;;  %1742 = vmatmul.mubr.msk.f32.vlgmr.msra.gmra.mrb[18].mxu1 %vm882_vm4, %v881_v36  ;;  %v863_v49 = vpop.f32.mrb[29].mxu0  ;;  %v1652_v39 = vld [vmem:[%s2670_s5 + $0x40] sm:$0xff]  ;;  %v2031_v6 = vpack.c.bf16 %v1678_v5, %v1677_v4 }
 0x2bf   :  { %1996 = vmatpush3.bf16.msra.mxu1 %v1995_v34  ;;  %1752 = vmatprep.mubr.msk.f32.mxu1 %vm2072_vm3, %v2070_v7  ;;  %v2001_v25 = vpack.c.bf16 %v1653_v9, %v1652_v39 }
 0x2c0   :  { %v867_v50 = vmax.f32 %v862_v45, 0.0  ;;  %1786 = vmatmul.mubr.msk.f32.vlgmr.msra.gmra.mrb[30].mxu0 %vm882_vm4, %v2539_v44  ;;  %1997 = vmatprep.subr.bf16.mxu1 %v2071_v13  ;;  %v1348_v35 = vrot.slane %v2539_v44, 4  ;;  %v1269_v10 = vrot.slane %v2539_v44, 2  ;;  %v1427_v17 = vrot.slane %v2539_v44, 6 }
 0x2c1   :  { %2026 = vmatpush3.bf16.msra.mxu0 %v2025_v42  ;;  %1807 = vmatprep.mubr.msk.f32.mxu0 %vm2072_vm3, %v2070_v7 }
 0x2c2   :  { %v870_v16 = vmax.f32 %v673_v14, %v867_v50  ;;  %2027 = vmatprep.subr.bf16.mxu0 %v2071_v13  ;;  %v2034_v14 = vpack.c.bf16 %v1680_v12, %v1679_v11 }
 0x2c3   :  { %1999 = vmatpush3.bf16.msra.mxu1 %v1998_v8  ;;  %v1687_v8 = vld [vmem:[%s2671_s6] ss:$0 sm:$0xff] }
 0x2c4   :  { %2000 = vmatprep.subr.bf16.mxu1 %v2071_v13 }
 0x2c5   :  { %2029 = vmatpush3.bf16.msra.mxu0 %v2028_v15 }
 0x2c6   :  { %1753 = vmatmul.mubr.msk.f32.vlgmr.msra.gmra.mrb[20].mxu1 %vm882_vm4, %v2523_v27  ;;  %2036 = vmatprep.subr.bf16.mxu0 %v2071_v13 }
 0x2c7   :  { %2002 = vmatpush3.bf16.msra.mxu1 %v2001_v25  ;;  %1763 = vmatprep.mubr.msk.f32.mxu1 %vm2072_vm3, %v2070_v7 }
 0x2c8   :  { %1808 = vmatmul.mubr.msk.f32.vlgmr.msra.gmra.mrb[32].mxu0 %vm882_vm4, %v1348_v35  ;;  %2003 = vmatprep.subr.bf16.mxu1 %v2071_v13 }
 0x2c9   :  { %2038 = vmatpush3.bf16.msra.mxu0 %v2037_v31  ;;  %1829 = vmatprep.mubr.msk.f32.mxu0 %vm2072_vm3, %v2070_v7 }
 0x2ca   :  { %2039 = vmatprep.subr.bf16.mxu0 %v2071_v13 }
 0x2cb   :  { %2005 = vmatpush3.bf16.msra.mxu1 %v2004_v43 }
 0x2cc   :  { %2006 = vmatprep.subr.bf16.mxu1 %v2071_v13 }
 0x2cd   :  { %2041 = vmatpush3.bf16.msra.mxu0 %v2040_v52 }
 0x2ce   :  { %1764 = vmatmul.mubr.msk.f32.vlgmr.msra.gmra.mrb[22].mxu1 %vm882_vm4, %v1032_v54 }
 0x2cf   :  { %2008 = vmatpush3.bf16.msra.mxu1 %v2007_v53  ;;  %1774 = vmatprep.mubr.msk.f32.mxu1 %vm2072_vm3, %v2070_v7 }
 0x2d0   :  { %1830 = vmatmul.mubr.msk.f32.vlgmr.msra.gmra.mrb[34].mxu0 %vm882_vm4, %v870_v16  ;;  %2009 = vmatprep.subr.bf16.mxu1 %v2071_v13 }
 0x2d3   :  { %2011 = vmatpush3.bf16.msra.mxu1 %v2010_v57 }
 0x2d4   :  { %2018 = vmatprep.subr.bf16.mxu1 %v2071_v13 }
 0x2d6   :  { %1775 = vmatmul.mubr.msk.f32.vlgmr.msra.gmra.mrb[24].mxu1 %vm882_vm4, %v1111_v63 }
 0x2d7   :  { %2020 = vmatpush3.bf16.msra.mxu1 %v2019_v62  ;;  %1796 = vmatprep.mubr.msk.f32.mxu1 %vm2072_vm3, %v2070_v7 }
 0x2d8   :  { %2021 = vmatprep.subr.bf16.mxu1 %v2071_v13 }
 0x2db   :  { %2023 = vmatpush3.bf16.msra.mxu1 %v2022_v3 }
 0x2dc   :  { %2030 = vmatprep.subr.bf16.mxu1 %v2071_v13 }
 0x2de   :  { %1797 = vmatmul.mubr.msk.f32.vlgmr.msra.gmra.mrb[26].mxu1 %vm882_vm4, %v1269_v10 }
 0x2df   :  { %2032 = vmatpush3.bf16.msra.mxu1 %v2031_v6  ;;  %1818 = vmatprep.mubr.msk.f32.mxu1 %vm2072_vm3, %v2070_v7 }
 0x2e0   :  { %2033 = vmatprep.subr.bf16.mxu1 %v2071_v13 }
 0x2e3   :  { %2035 = vmatpush3.bf16.msra.mxu1 %v2034_v14 }
 0x2e6   :  { %1819 = vmatmul.mubr.msk.f32.vlgmr.msra.gmra.mrb[28].mxu1 %vm882_vm4, %v1427_v17 }
 0x391   :  { %v951_v18 = vpop.f32.mrb[18].mxu1 }
 0x392   :  { %v1743_v19 = vpop.f32.mrb[19].mxu1 }
 0x393   :  { %v1259_v20 = vpop.f32.mrb[30].mxu0 }
 0x394   :  { %v1787_v2 = vpop.f32.mrb[31].mxu0 }
 0x399   :  { %v1023_v22 = vpop.f32.mrb[20].mxu1 }
 0x39a   :  { %v1024_v21 = vadd.f32 %v1023_v22, %v951_v18  ;;  %v1754_v27 = vpop.f32.mrb[21].mxu1 }
 0x39b   :  { %v1417_v28 = vpop.f32.mrb[32].mxu0 }
 0x39c   :  { %v1809_v30 = vpop.f32.mrb[33].mxu0 }
 0x3a1   :  { %v1101_v32 = vpop.f32.mrb[22].mxu1 }
 0x3a2   :  { %v1105_v33 = vadd.f32 %v1101_v32, %v1024_v21  ;;  %v1765_v34 = vpop.f32.mrb[23].mxu1 }
 0x3a3   :  { %v1575_v7 = vpop.f32.mrb[34].mxu0 }
 0x3a4   :  { %v1831_v36 = vpop.f32.mrb[35].mxu0 }
 0x3a9   :  { %v1180_v13 = vpop.f32.mrb[24].mxu1 }
 0x3aa   :  { %v1184_v37 = vadd.f32 %v1180_v13, %v1105_v33  ;;  %v1776_v38 = vpop.f32.mrb[25].mxu1 }
 0x3ac   :  { %v1263_v40 = vadd.f32 %v1259_v20, %v1184_v37 }
 0x3b1   :  { %v1338_v41 = vpop.f32.mrb[26].mxu1 }
 0x3b2   :  { %v1342_v42 = vadd.f32 %v1338_v41, %v1263_v40  ;;  %v1798_v44 = vpop.f32.mrb[27].mxu1 }
 0x3b4   :  { %v1421_v45 = vadd.f32 %v1417_v28, %v1342_v42 }
 0x3b9   :  { %v1496_v46 = vpop.f32.mrb[28].mxu1 }
 0x3ba   :  { %v1500_v48 = vadd.f32 %v1496_v46, %v1421_v45  ;;  %v1820_v49 = vpop.f32.mrb[29].mxu1 }
 0x3bc   :  { %v1579_v50 = vadd.f32 %v1575_v7, %v1500_v48 }
 0x3be   :  { %v1587_v39 = vadd.f32 %v1687_v8, %v1579_v50 }
 0x3c0   :  { %1589 = vst.msk [vmem:[#allocation2] sm:$0x3] %vm1588_vm5, %v1587_v39 }
 0x3c1   :  { %2057 = shalt.err (!%p2054_p4)
}
 0x3c2   :  { %s2058_s14 = scalar_lea.hbm %s2672_s7, 32 }
 0x3c3   :  { %p2059_p5 = scmp.ne.s32.totalorder %s2672_s7, %s2058_s14  ;;  %p2062_p6 = scmp.lt.u32.totalorder %s2058_s14, %s2672_s7 }
 0x3c5   :  { %p2064_p7 = pnand %p2062_p6, %p2059_p5 }
 0x3c7   :  { %2067 = shalt.err (!%p2064_p7)
}
 0x3c8   :  { %1599 = dma.vmem_to_hbm [thread:$0]  %s1597_s10, 32, %s2672_s7, [#allocation3]  }
 0x3c9   :  { %2068 = dma.done.wait [#allocation3], 32  }
 0x3ca   :  { %2069 = vsyncadd [#allocation3], 4294967264 }
 0x3cb   :  { %1603 = vsyncpa [#allocation3], 1 }

</bundles_post_ra>
